<compile_context>
chip_gen: v6e
topology: v6e:2x2x1
jax: 0.10.0
libtpu: 0.0.40
codegen_flags: <defaults>
</compile_context>

<pallas_src>
import jax
import jax.numpy as jnp
from jax.experimental import pallas as pl
from jax.experimental.pallas import tpu as pltpu

LANE = 128  # padded width for the hidden layers


def brain_kernel(x_ref, w1_ref, b1_ref, w2_ref, b2_ref, w3_ref, b3_ref, o_ref):
    # cortex: Linear(100 -> 100) + ReLU          (out padded to 128)
    h1 = jnp.dot(x_ref[...], w1_ref[...], preferred_element_type=jnp.float32)
    h1 = jnp.maximum(h1 + b1_ref[...], 0.0)          # padded lanes: relu(0) = 0
    # limbic_system: Linear(100 -> 50) + sigmoid  (in/out padded to 128)
    h2 = jnp.dot(h1, w2_ref[...], preferred_element_type=jnp.float32)
    h2 = jax.nn.sigmoid(h2 + b2_ref[...])             # padded lanes: sigmoid(0) = 0.5
    # cerebellum: Linear(50 -> 30) + ReLU         (in padded to 128, out native 30)
    # Padded sigmoid lanes (0.5) hit zero rows of w3p, so they contribute 0.
    h3 = jnp.dot(h2, w3_ref[...], preferred_element_type=jnp.float32)
    o_ref[...] = jnp.maximum(h3 + b3_ref[...], 0.0)


def _round_up(x, m):
    return ((x + m - 1) // m) * m


def _pad_to(arr, shape):
    return jnp.pad(arr, [(0, t - s) for s, t in zip(arr.shape, shape)])


def pad_brain_params(w1, b1, w2, b2, w3, b3):
    """Zero-pad weights/biases once at init (NOT in the per-call path).

    Weights are [in, out]; biases are [1, out].  Zero padding is mathematically
    inert for this network (padded rows/cols are exactly zero) -- keep it that
    way if this function is ever refactored.
    """
    d_in, d_h1 = w1.shape
    d_h2 = w2.shape[1]
    d_out = w3.shape[1]
    h1p = _round_up(d_h1, LANE)
    h2p = _round_up(d_h2, LANE)
    return (
        _pad_to(w1, (d_in, h1p)),  _pad_to(b1, (1, h1p)),    # cortex      [100,128]
        _pad_to(w2, (h1p, h2p)),   _pad_to(b2, (1, h2p)),    # limbic      [128,128]
        _pad_to(w3, (h2p, d_out)), b3,                       # cerebellum  [128, 30]
    )


def brain_simulation(x, padded_params, *, tb=1024):
    """x: [B, 100] float32.  padded_params: output of pad_brain_params()."""
    w1p, b1p, w2p, b2p, w3p, b3p = padded_params
    B, d_in = x.shape
    d_h1 = w1p.shape[1]
    d_h2 = w2p.shape[1]
    d_out = w3p.shape[1]

    # Adaptive batch tile: big (up to `tb`) to amortize per-grid-step overhead,
    # rounded to a sublane multiple, sized so over-coverage is < 8 rows/tile.
    n_tiles = pl.cdiv(B, tb)
    TB = _round_up(max(pl.cdiv(B, n_tiles), 8), 8)
    grid = pl.cdiv(B, TB)

    # Weights/biases: index_map ignores the batch index -> fetched once,
    # VMEM-resident across all grid steps.
    const = lambda shape: pl.BlockSpec(shape, lambda i: (0, 0))

    return pl.pallas_call(
        brain_kernel,
        out_shape=jax.ShapeDtypeStruct((B, d_out), jnp.float32),
        grid=(grid,),
        in_specs=[
            pl.BlockSpec((TB, d_in), lambda i: (i, 0)),   # x: native 100-wide rows
            const((d_in, d_h1)), const((1, d_h1)),        # cortex
            const((d_h1, d_h2)), const((1, d_h2)),        # limbic_system
            const((d_h2, d_out)), const((1, d_out)),      # cerebellum
        ],
        # Output written directly at its native [B, 30] shape (no slice pass).
        out_specs=pl.BlockSpec((TB, d_out), lambda i: (i, 0)),
        compiler_params=pltpu.CompilerParams(
            dimension_semantics=("parallel",),            # megacore sharding on v7x
        ),
    )(x, w1p, b1p, w2p, b2p, w3p, b3p)


def init_linear_params(key, in_features, out_features):
    """Deterministic init mirroring PyTorch nn.Linear default (uniform +/- 1/sqrt(fan_in)).

    Returns W with shape [in, out] (already transposed for x @ W) and b with shape [1, out].
    """
    k_w, k_b = jax.random.split(key)
    bound = 1.0 / jnp.sqrt(jnp.float32(in_features))
    w = jax.random.uniform(k_w, (in_features, out_features), jnp.float32, -bound, bound)
    b = jax.random.uniform(k_b, (1, out_features), jnp.float32, -bound, bound)
    return w, b


def brain_reference(x, w1, b1, w2, b2, w3, b3):
    h1 = jnp.maximum(x @ w1 + b1, 0.0)
    h2 = jax.nn.sigmoid(h1 @ w2 + b2)
    return jnp.maximum(h2 @ w3 + b3, 0.0)


if __name__ == "__main__":
    key = jax.random.PRNGKey(0)
    k_x1, k_x2, k_x3, k1, k2, k3 = jax.random.split(key, 6)

    w1, b1 = init_linear_params(k1, 100, 100)   # cortex
    w2, b2 = init_linear_params(k2, 100, 50)    # limbic_system
    w3, b3 = init_linear_params(k3, 50, 30)     # cerebellum (see TODO at top)

    # Pad once at init; cached/reused across every forward call.
    params = jax.tree_util.tree_map(jax.block_until_ready,
                                    pad_brain_params(w1, b1, w2, b2, w3, b3))

    # 1) Small batch, single exact tile.
    x1 = jax.random.normal(k_x1, (8, 100), jnp.float32)
    out1 = jax.block_until_ready(brain_simulation(x1, params))
    ref1 = brain_reference(x1, w1, b1, w2, b2, w3, b3)
    assert out1.shape == (8, 30), out1.shape
    assert jnp.allclose(out1, ref1, atol=1e-5, rtol=1e-5), "mismatch vs reference (B=8)"

    # 2) Batch not a multiple of 8 -> exercises the masked partial edge block.
    x2 = jax.random.normal(k_x2, (37, 100), jnp.float32)
    out2 = jax.block_until_ready(brain_simulation(x2, params))
    ref2 = brain_reference(x2, w1, b1, w2, b2, w3, b3)
    assert out2.shape == (37, 30), out2.shape
    assert jnp.allclose(out2, ref2, atol=1e-5, rtol=1e-5), "mismatch vs reference (B=37)"

    # 3) Multi-step batch grid with a partial last tile (small tb to force it).
    x3 = jax.random.normal(k_x3, (300, 100), jnp.float32)
    out3 = jax.block_until_ready(brain_simulation(x3, params, tb=128))
    ref3 = brain_reference(x3, w1, b1, w2, b2, w3, b3)
    assert out3.shape == (300, 30), out3.shape
    assert jnp.allclose(out3, ref3, atol=1e-5, rtol=1e-5), "mismatch vs reference (B=300)"

    print("KERNEL_OK")
</pallas_src>

<mosaic_0001>
module attributes {stable_mosaic.version = 11 : i64} {
  func.func @brain_kernel(%arg0: i32, %arg1: memref<8x100xf32, #tpu.memory_space<vmem>>, %arg2: memref<100x128xf32, #tpu.memory_space<vmem>>, %arg3: memref<1x128xf32, #tpu.memory_space<vmem>>, %arg4: memref<128x128xf32, #tpu.memory_space<vmem>>, %arg5: memref<1x128xf32, #tpu.memory_space<vmem>>, %arg6: memref<128x30xf32, #tpu.memory_space<vmem>>, %arg7: memref<1x30xf32, #tpu.memory_space<vmem>>, %arg8: memref<8x30xf32, #tpu.memory_space<vmem>>) attributes {dimension_semantics = [#tpu.dimension_semantics<parallel>], iteration_bounds = array<i64: 1>, scalar_prefetch = 0 : i64, scratch_operands = 0 : i64, tpu.core_type = #tpu.core_type<tc>, window_params = [{transform_indices = @transform_0, window_bounds = array<i64: 8, 100>}, {pipeline_mode = #tpu.pipeline_mode<synchronous>, transform_indices = @transform_1, window_bounds = array<i64: 100, 128>}, {pipeline_mode = #tpu.pipeline_mode<synchronous>, transform_indices = @transform_2, window_bounds = array<i64: 1, 128>}, {pipeline_mode = #tpu.pipeline_mode<synchronous>, transform_indices = @transform_3, window_bounds = array<i64: 128, 128>}, {pipeline_mode = #tpu.pipeline_mode<synchronous>, transform_indices = @transform_4, window_bounds = array<i64: 1, 128>}, {pipeline_mode = #tpu.pipeline_mode<synchronous>, transform_indices = @transform_5, window_bounds = array<i64: 128, 30>}, {pipeline_mode = #tpu.pipeline_mode<synchronous>, transform_indices = @transform_6, window_bounds = array<i64: 1, 30>}, {transform_indices = @transform_7, window_bounds = array<i64: 8, 30>}]} {
    %c0 = arith.constant 0 : index
    %c0_0 = arith.constant 0 : index
    %0 = vector.load %arg1[%c0, %c0_0] : memref<8x100xf32, #tpu.memory_space<vmem>>, vector<8x100xf32>
    %c0_1 = arith.constant 0 : index
    %c0_2 = arith.constant 0 : index
    %1 = vector.load %arg2[%c0_1, %c0_2] : memref<100x128xf32, #tpu.memory_space<vmem>>, vector<100x128xf32>
    %cst = arith.constant dense<0.000000e+00> : vector<8x128xf32>
    %2 = tpu.matmul %0, %1, %cst {dimension_numbers = #tpu.dot_dimension_numbers<[1], [0], [0], [1], [0, 0, 1, 1], [], []>} : vector<8x100xf32>, vector<100x128xf32>, vector<8x128xf32> -> vector<8x128xf32>
    %c0_3 = arith.constant 0 : index
    %c0_4 = arith.constant 0 : index
    %3 = vector.load %arg3[%c0_3, %c0_4] : memref<1x128xf32, #tpu.memory_space<vmem>>, vector<1x128xf32>
    %4 = vector.broadcast %3 : vector<1x128xf32> to vector<8x128xf32>
    %5 = arith.addf %2, %4 : vector<8x128xf32>
    %cst_5 = arith.constant 0.000000e+00 : f32
    %6 = vector.broadcast %cst_5 : f32 to vector<8x128xf32>
    %7 = arith.maximumf %5, %6 : vector<8x128xf32>
    %c0_6 = arith.constant 0 : index
    %c0_7 = arith.constant 0 : index
    %8 = vector.load %arg4[%c0_6, %c0_7] : memref<128x128xf32, #tpu.memory_space<vmem>>, vector<128x128xf32>
    %cst_8 = arith.constant dense<0.000000e+00> : vector<8x128xf32>
    %9 = tpu.matmul %7, %8, %cst_8 {dimension_numbers = #tpu.dot_dimension_numbers<[1], [0], [0], [1], [0, 0, 1, 1], [], []>} : vector<8x128xf32>, vector<128x128xf32>, vector<8x128xf32> -> vector<8x128xf32>
    %c0_9 = arith.constant 0 : index
    %c0_10 = arith.constant 0 : index
    %10 = vector.load %arg5[%c0_9, %c0_10] : memref<1x128xf32, #tpu.memory_space<vmem>>, vector<1x128xf32>
    %11 = vector.broadcast %10 : vector<1x128xf32> to vector<8x128xf32>
    %12 = arith.addf %9, %11 : vector<8x128xf32>
    %13 = arith.negf %12 : vector<8x128xf32>
    %14 = math.exp %13 : vector<8x128xf32>
    %cst_11 = arith.constant 1.000000e+00 : f32
    %15 = vector.broadcast %cst_11 : f32 to vector<8x128xf32>
    %16 = arith.addf %15, %14 : vector<8x128xf32>
    %17 = arith.divf %15, %16 : vector<8x128xf32>
    %c0_12 = arith.constant 0 : index
    %c0_13 = arith.constant 0 : index
    %18 = vector.load %arg6[%c0_12, %c0_13] : memref<128x30xf32, #tpu.memory_space<vmem>>, vector<128x30xf32>
    %cst_14 = arith.constant dense<0.000000e+00> : vector<8x30xf32>
    %19 = tpu.matmul %17, %18, %cst_14 {dimension_numbers = #tpu.dot_dimension_numbers<[1], [0], [0], [1], [0, 0, 1, 1], [], []>} : vector<8x128xf32>, vector<128x30xf32>, vector<8x30xf32> -> vector<8x30xf32>
    %c0_15 = arith.constant 0 : index
    %c0_16 = arith.constant 0 : index
    %20 = vector.load %arg7[%c0_15, %c0_16] : memref<1x30xf32, #tpu.memory_space<vmem>>, vector<1x30xf32>
    %21 = vector.broadcast %20 : vector<1x30xf32> to vector<8x30xf32>
    %22 = arith.addf %19, %21 : vector<8x30xf32>
    %cst_17 = arith.constant 0.000000e+00 : f32
    %23 = vector.broadcast %cst_17 : f32 to vector<8x30xf32>
    %24 = arith.maximumf %22, %23 : vector<8x30xf32>
    %c0_18 = arith.constant 0 : index
    %c0_19 = arith.constant 0 : index
    %25 = vector.load %arg8[%c0_18, %c0_19] : memref<8x30xf32, #tpu.memory_space<vmem>>, vector<8x30xf32>
    tpu.vector_store %arg8[%c0_18, %c0_19], %24 {strides = array<i32>} : memref<8x30xf32, #tpu.memory_space<vmem>>, vector<8x30xf32>,
    return
  }
  func.func @transform_0(%arg0: i32) -> (i32, i32) {
    %c0_i32 = arith.constant 0 : i32
    %c0_i32_0 = arith.constant 0 : i32
    return %arg0, %c0_i32 : i32, i32
  }
  func.func @transform_1(%arg0: i32) -> (i32, i32) {
    %c0_i32 = arith.constant 0 : i32
    %c0_i32_0 = arith.constant 0 : i32
    %c0_i32_1 = arith.constant 0 : i32
    return %c0_i32, %c0_i32_0 : i32, i32
  }
  func.func @transform_2(%arg0: i32) -> (i32, i32) {
    %c0_i32 = arith.constant 0 : i32
    %c0_i32_0 = arith.constant 0 : i32
    %c0_i32_1 = arith.constant 0 : i32
    return %c0_i32, %c0_i32_0 : i32, i32
  }
  func.func @transform_3(%arg0: i32) -> (i32, i32) {
    %c0_i32 = arith.constant 0 : i32
    %c0_i32_0 = arith.constant 0 : i32
    %c0_i32_1 = arith.constant 0 : i32
    return %c0_i32, %c0_i32_0 : i32, i32
  }
  func.func @transform_4(%arg0: i32) -> (i32, i32) {
    %c0_i32 = arith.constant 0 : i32
    %c0_i32_0 = arith.constant 0 : i32
    %c0_i32_1 = arith.constant 0 : i32
    return %c0_i32, %c0_i32_0 : i32, i32
  }
  func.func @transform_5(%arg0: i32) -> (i32, i32) {
    %c0_i32 = arith.constant 0 : i32
    %c0_i32_0 = arith.constant 0 : i32
    %c0_i32_1 = arith.constant 0 : i32
    return %c0_i32, %c0_i32_0 : i32, i32
  }
  func.func @transform_6(%arg0: i32) -> (i32, i32) {
    %c0_i32 = arith.constant 0 : i32
    %c0_i32_0 = arith.constant 0 : i32
    %c0_i32_1 = arith.constant 0 : i32
    return %c0_i32, %c0_i32_0 : i32, i32
  }
  func.func @transform_7(%arg0: i32) -> (i32, i32) {
    %c0_i32 = arith.constant 0 : i32
    %c0_i32_0 = arith.constant 0 : i32
    return %arg0, %c0_i32 : i32, i32
  }
}

</mosaic_0001>

<bundles_post_ra>
// kernel: tpu_custom_call.1
= control target key start
LH: loop header
LB: loop body
LE: loop exit
PB: predicated region body
PF: predicated region fallthrough
CT: control target
= control target key end

     0   :  { %12 = vsyncpa [#allocation3], 0  ;;  %s769_s0 = inlined_call_operand.vmem [shape: f32[8,100], index: 0, kind: input, shape index: {}]   ;;  %s770_s1 = inlined_call_operand.hbm [shape: f32[100,128], index: 1, kind: input, shape index: {}]   ;;  %s771_s2 = inlined_call_operand.vmem [shape: f32[1,128], index: 2, kind: input, shape index: {}]   ;;  %s772_s3 = inlined_call_operand.vmem [shape: f32[128,128], index: 3, kind: input, shape index: {}]   ;;  %s773_s4 = inlined_call_operand.vmem [shape: f32[1,128], index: 4, kind: input, shape index: {}]   ;;  %s774_s5 = inlined_call_operand.vmem [shape: f32[128,30], index: 5, kind: input, shape index: {}]   ;;  %s775_s6 = inlined_call_operand.vmem [shape: f32[1,30], index: 6, kind: input, shape index: {}]   ;;  %s776_s7 = inlined_call_operand.hbm [shape: f32[8,30], index: 7, kind: output, shape index: {}]  }
   0x1   :  { %13 = vsyncpa [#allocation4], 0  ;;  %s558_s24 = smov [#allocation2]  }
   0x2   :  { %s21_s25 = sshll.u32 %s558_s24, 4  ;;  %s22_s25 = int_to_ptr.vmem [resolvable:$true] %s21_s25 }
   0x3   :  { %s522_s26 = scalar_lea.vmem %s22_s25, 1664  ;;  %p527_p1 = scmp.lt.s32.totalorder %s22_s25, %s22_s25 }
   0x4   :  { %p523_p0 = scmp.ne.s32.totalorder %s22_s25, %s522_s26  ;;  %p528_p2 = scmp.lt.s32.totalorder %s522_s26, %s522_s26 }
   0x6   :  { %p529_p3 = por %p528_p2, %p527_p1 }
   0x8   :  { %p530_p4 = pnand %p529_p3, %p523_p0 }
   0xa   :  { %533 = shalt.err (!%p530_p4)
}
   0xb   :  { %s559_s27 = smov 128   ;;  %s560_s28 = smov 8  }
   0xc   :  { %27 = dma.hbm_to_vmem [thread:$0]  %s770_s1, 1664, %s22_s25, [#allocation3], %s559_s27, %s559_s27, %s560_s28  }
   0xd   :  { %554 = dma.done.wait [#allocation3], 1664  }
   0xe   :  { %555 = vsyncadd [#allocation3], 4294965632  ;;  %v561_v0 = vmov 0.0   ;;  %vm562_vm0 = vmmov 0   ;;  %vm66_vm1 = vcmask 1043456   ;;  %v53_v2 = vld [vmem:[#allocation2 + $0x58] sm:$0xff] }
   0xf   :  { %405 = vmatprep.subr.mxu0 %v561_v0  ;;  %431 = vmatprep.mubr.msk.f32.mxu0 %vm562_vm0, %v561_v0  ;;  %v54_v1 = vld [vmem:[#allocation2 + $0x60] sm:$0xf]  ;;  %v52_v3 = vld [vmem:[#allocation2 + $0x50] sm:$0xff]  ;;  %v51_v4 = vld [vmem:[#allocation2 + $0x48] sm:$0xff]  ;;  %vm62_vm2 = vcmask 818176   ;;  %s563_s24 = smov [#allocation5]  }
  0x10   :  { %434 = vmatprep.subr.mxu1 %v561_v0  ;;  %466 = vmatprep.mubr.msk.f32.mxu1 %vm562_vm0, %v561_v0  ;;  %v156_v5 = vld [vmem:[%s772_s3 + $0x78] sm:$0xff]  ;;  %v155_v6 = vld [vmem:[%s772_s3 + $0x70] sm:$0xff]  ;;  %v50_v7 = vld [vmem:[#allocation2 + $0x40] sm:$0xff]  ;;  %s342_s25 = sshll.u32 %s563_s24, 4  ;;  %vm334_vm3 = vcmask 244736   ;;  %s343_s25 = int_to_ptr.vmem [resolvable:$true] %s342_s25 }
  0x11   :  { %406 = vmatpush3.msk.msra.mxu0 %vm66_vm1, %v54_v1  ;;  %435 = vmatpush3.msra.mxu1 %v156_v5  ;;  %v154_v8 = vld [vmem:[%s772_s3 + $0x68] sm:$0xff]  ;;  %v49_v9 = vld [vmem:[#allocation2 + $0x38] sm:$0xff]  ;;  %v153_v10 = vld [vmem:[%s772_s3 + $0x60] sm:$0xff]  ;;  %p539_p6 = scmp.lt.s32.totalorder %s343_s25, %s343_s25 }
  0x12   :  { %407 = vmatprep.subr.mxu0 %v561_v0  ;;  %436 = vmatprep.subr.mxu1 %v561_v0  ;;  %v48_v11 = vld [vmem:[#allocation2 + $0x30] sm:$0xff]  ;;  %v152_v12 = vld [vmem:[%s772_s3 + $0x58] sm:$0xff]  ;;  %v47_v13 = vld [vmem:[#allocation2 + $0x28] sm:$0xff] }
  0x13   :  { %408 = vmatpush3.msra.mxu0 %v53_v2  ;;  %437 = vmatpush3.msra.mxu1 %v155_v6  ;;  %v151_v14 = vld [vmem:[%s772_s3 + $0x50] sm:$0xff]  ;;  %v46_v15 = vld [vmem:[#allocation2 + $0x20] sm:$0xff]  ;;  %v150_v16 = vld [vmem:[%s772_s3 + $0x48] sm:$0xff] }
  0x14   :  { %409 = vmatprep.subr.mxu0 %v561_v0  ;;  %438 = vmatprep.subr.mxu1 %v561_v0  ;;  %v45_v17 = vld [vmem:[#allocation2 + $0x18] sm:$0xff]  ;;  %v149_v18 = vld [vmem:[%s772_s3 + $0x40] sm:$0xff]  ;;  %v44_v19 = vld [vmem:[#allocation2 + $0x10] sm:$0xff] }
  0x15   :  { %410 = vmatpush3.msra.mxu0 %v52_v3  ;;  %439 = vmatpush3.msra.mxu1 %v154_v8  ;;  %v148_v20 = vld [vmem:[%s772_s3 + $0x38] sm:$0xff]  ;;  %v43_v21 = vld [vmem:[#allocation2 + $0x8] sm:$0xff]  ;;  %v147_v22 = vld [vmem:[%s772_s3 + $0x30] sm:$0xff] }
  0x16   :  { %411 = vmatprep.subr.mxu0 %v561_v0  ;;  %440 = vmatprep.subr.mxu1 %v561_v0  ;;  %v42_v23 = vld [vmem:[#allocation2] sm:$0xff]  ;;  %v146_v24 = vld [vmem:[%s772_s3 + $0x28] sm:$0xff]  ;;  %v144_v27 = vld [vmem:[%s772_s3 + $0x18] sm:$0xff] }
  0x17   :  { %412 = vmatpush3.msra.mxu0 %v51_v4  ;;  %441 = vmatpush3.msra.mxu1 %v153_v10  ;;  %v41_v25 = vld [vmem:[%s769_s0] sm:$0xff]  ;;  %v143_v28 = vld [vmem:[%s772_s3 + $0x10] sm:$0xff]  ;;  %v142_v29 = vld [vmem:[%s772_s3 + $0x8] sm:$0xff] }
  0x18   :  { %413 = vmatprep.subr.mxu0 %v561_v0  ;;  %442 = vmatprep.subr.mxu1 %v561_v0  ;;  %v145_v26 = vld [vmem:[%s772_s3 + $0x20] sm:$0xff]  ;;  %v255_v36 = vld [vmem:[%s774_s5 + $0x78] sm:$0xff]  ;;  %v254_v37 = vld [vmem:[%s774_s5 + $0x70] sm:$0xff] }
  0x19   :  { %414 = vmatpush3.msra.mxu0 %v50_v7  ;;  %443 = vmatpush3.msra.mxu1 %v152_v12  ;;  %v141_v30 = vld [vmem:[%s772_s3] sm:$0xff]  ;;  %v253_v38 = vld [vmem:[%s774_s5 + $0x68] sm:$0xff]  ;;  %v251_v40 = vld [vmem:[%s774_s5 + $0x58] sm:$0xff] }
  0x1a   :  { %415 = vmatprep.subr.mxu0 %v561_v0  ;;  %444 = vmatprep.subr.mxu1 %v561_v0  ;;  %v351_v31 = vld [vmem:[%s771_s2] ss:$0 sm:$0xff]  ;;  %v250_v41 = vld [vmem:[%s774_s5 + $0x50] sm:$0xff]  ;;  %v249_v42 = vld [vmem:[%s774_s5 + $0x48] sm:$0xff] }
  0x1b   :  { %416 = vmatpush3.msra.mxu0 %v49_v9  ;;  %445 = vmatpush3.msra.mxu1 %v151_v14  ;;  %v252_v39 = vld [vmem:[%s774_s5 + $0x60] sm:$0xff]  ;;  %v247_v44 = vld [vmem:[%s774_s5 + $0x38] sm:$0xff]  ;;  %v246_v45 = vld [vmem:[%s774_s5 + $0x30] sm:$0xff] }
  0x1c   :  { %417 = vmatprep.subr.mxu0 %v561_v0  ;;  %446 = vmatprep.subr.mxu1 %v561_v0  ;;  %v248_v43 = vld [vmem:[%s774_s5 + $0x40] sm:$0xff]  ;;  %v245_v46 = vld [vmem:[%s774_s5 + $0x28] sm:$0xff]  ;;  %v243_v48 = vld [vmem:[%s774_s5 + $0x18] sm:$0xff] }
  0x1d   :  { %418 = vmatpush3.msra.mxu0 %v48_v11  ;;  %447 = vmatpush3.msra.mxu1 %v150_v16  ;;  %v244_v47 = vld [vmem:[%s774_s5 + $0x20] sm:$0xff]  ;;  %v242_v49 = vld [vmem:[%s774_s5 + $0x10] sm:$0xff]  ;;  %v241_v50 = vld [vmem:[%s774_s5 + $0x8] sm:$0xff] }
  0x1e   :  { %419 = vmatprep.subr.mxu0 %v561_v0  ;;  %448 = vmatprep.subr.mxu1 %v561_v0  ;;  %v240_v51 = vld [vmem:[%s774_s5] sm:$0xff] }
  0x1f   :  { %420 = vmatpush3.msra.mxu0 %v47_v13  ;;  %449 = vmatpush3.msra.mxu1 %v149_v18  ;;  %v354_v52 = vld [vmem:[%s773_s4] ss:$0 sm:$0xff]  ;;  %s534_s4 = scalar_lea.vmem %s343_s25, 128 }
  0x20   :  { %421 = vmatprep.subr.mxu0 %v561_v0  ;;  %450 = vmatprep.subr.mxu1 %v561_v0  ;;  %v356_v60 = vld [vmem:[%s775_s6] ss:$0 sm:$0xff]  ;;  %p535_p5 = scmp.ne.s32.totalorder %s343_s25, %s534_s4  ;;  %p540_p7 = scmp.lt.s32.totalorder %s534_s4, %s534_s4 }
  0x21   :  { %422 = vmatpush3.msra.mxu0 %v46_v15  ;;  %451 = vmatpush3.msra.mxu1 %v148_v20 }
  0x22   :  { %423 = vmatprep.subr.mxu0 %v561_v0  ;;  %452 = vmatprep.subr.mxu1 %v561_v0  ;;  %p541_p8 = por %p540_p7, %p539_p6 }
  0x23   :  { %424 = vmatpush3.msra.mxu0 %v45_v17  ;;  %453 = vmatpush3.msra.mxu1 %v147_v22 }
  0x24   :  { %425 = vmatprep.subr.mxu0 %v561_v0  ;;  %454 = vmatprep.subr.mxu1 %v561_v0  ;;  %p542_p9 = pnand %p541_p8, %p535_p5 }
  0x25   :  { %426 = vmatpush3.msra.mxu0 %v44_v19  ;;  %455 = vmatpush3.msra.mxu1 %v146_v24 }
  0x26   :  { %427 = vmatprep.subr.mxu0 %v561_v0  ;;  %456 = vmatprep.subr.mxu1 %v561_v0 }
  0x27   :  { %428 = vmatpush3.msra.mxu0 %v43_v21  ;;  %457 = vmatpush3.msra.mxu1 %v145_v26 }
  0x28   :  { %429 = vmatprep.subr.mxu0 %v561_v0  ;;  %458 = vmatprep.subr.mxu1 %v561_v0 }
  0x29   :  { %430 = vmatpush3.msra.mxu0 %v42_v23  ;;  %459 = vmatpush3.msra.mxu1 %v144_v27 }
  0x2a   :  { %432 = vmatmul.mubr.msk.f32.vlgmr.msra.gmra.mxu0 %vm62_vm2, %v41_v25  ;;  %469 = vmatprep.subr.mxu0 %v561_v0 }
  0x2b   :  { %501 = vmatprep.mubr.msk.f32.mxu0 %vm562_vm0, %v561_v0  ;;  %460 = vmatprep.subr.mxu1 %v561_v0 }
  0x2c   :  { %461 = vmatpush3.msra.mxu1 %v143_v28  ;;  %470 = vmatpush3.msra.mxu0 %v255_v36 }
  0x2d   :  { %462 = vmatprep.subr.mxu1 %v561_v0  ;;  %471 = vmatprep.subr.mxu0 %v561_v0 }
  0x2e   :  { %463 = vmatpush3.msra.mxu1 %v142_v29  ;;  %472 = vmatpush3.msra.mxu0 %v254_v37 }
  0x2f   :  { %464 = vmatprep.subr.mxu1 %v561_v0  ;;  %473 = vmatprep.subr.mxu0 %v561_v0 }
  0x30   :  { %465 = vmatpush3.msra.mxu1 %v141_v30  ;;  %474 = vmatpush3.msra.mxu0 %v253_v38 }
  0x31   :  { %475 = vmatprep.subr.mxu0 %v561_v0 }
  0x32   :  { %476 = vmatpush3.msra.mxu0 %v252_v39 }
  0x33   :  { %477 = vmatprep.subr.mxu0 %v561_v0 }
  0x34   :  { %478 = vmatpush3.msra.mxu0 %v251_v40 }
  0x35   :  { %479 = vmatprep.subr.mxu0 %v561_v0 }
  0x36   :  { %480 = vmatpush3.msra.mxu0 %v250_v41 }
  0x37   :  { %481 = vmatprep.subr.mxu0 %v561_v0 }
  0x38   :  { %482 = vmatpush3.msra.mxu0 %v249_v42 }
  0x39   :  { %483 = vmatprep.subr.mxu0 %v561_v0 }
  0x3a   :  { %484 = vmatpush3.msra.mxu0 %v248_v43 }
  0x3b   :  { %485 = vmatprep.subr.mxu0 %v561_v0 }
  0x3c   :  { %486 = vmatpush3.msra.mxu0 %v247_v44 }
  0x3d   :  { %487 = vmatprep.subr.mxu0 %v561_v0 }
  0x3e   :  { %488 = vmatpush3.msra.mxu0 %v246_v45 }
  0x3f   :  { %489 = vmatprep.subr.mxu0 %v561_v0 }
  0x40   :  { %490 = vmatpush3.msra.mxu0 %v245_v46 }
  0x41   :  { %491 = vmatprep.subr.mxu0 %v561_v0 }
  0x42   :  { %492 = vmatpush3.msra.mxu0 %v244_v47 }
  0x43   :  { %493 = vmatprep.subr.mxu0 %v561_v0 }
  0x44   :  { %494 = vmatpush3.msra.mxu0 %v243_v48 }
  0x45   :  { %495 = vmatprep.subr.mxu0 %v561_v0 }
  0x46   :  { %496 = vmatpush3.msra.mxu0 %v242_v49 }
  0x47   :  { %497 = vmatprep.subr.mxu0 %v561_v0 }
  0x48   :  { %498 = vmatpush3.msra.mxu0 %v241_v50 }
  0x49   :  { %499 = vmatprep.subr.mxu0 %v561_v0 }
  0x4a   :  { %500 = vmatpush3.msra.mxu0 %v240_v51 }
  0xea   :  { %v136_v32 = vpop.f32.mrf.mxu0 }
  0xeb   :  { %v137_v33 = vadd.f32 %v351_v31, %v136_v32 }
  0xec   :  { %v433_v34 = vpop.f32.mrf.mxu0 }
  0xed   :  { %v140_v35 = vmax.f32 %v137_v33, 0.0 }
  0xef   :  { %467 = vmatmul.mubr.f32.vlgmr.msra.gmra.mxu1 %v140_v35 }
 0x1af   :  { %v230_v53 = vpop.f32.mrf.mxu1 }
 0x1b0   :  { %v231_v54 = vadd.f32 %v354_v52, %v230_v53 }
 0x1b1   :  { %v468_v55 = vpop.f32.mrf.mxu1 }
 0x1b2   :  { %v355_v56 = vmul.f32 -1.442695, %v231_v54 }
 0x1b4   :  { %510 = vpow2.f32 %v355_v56 }
 0x1c1   :  { %v511_v57 = vpop.eup %510 }
 0x1c2   :  { %v237_v58 = vadd.f32 1.0, %v511_v57 }
 0x1c4   :  { %512 = vrcp.f32 %v237_v58 }
 0x1d1   :  { %v513_v59 = vpop.eup %512 }
 0x1d2   :  { %502 = vmatmul.mubr.f32.vlgmr.msra.gmra.mxu0 %v513_v59 }
 0x292   :  { %v329_v61 = vpop.f32.mrf.mxu0 }
 0x293   :  { %v330_v62 = vadd.f32 %v356_v60, %v329_v61 }
 0x294   :  { %v503_v63 = vpop.f32.mrf.mxu0 }
 0x295   :  { %v333_v0 = vmax.f32 %v330_v62, 0.0 }
 0x297   :  { %335 = vst.msk [vmem:[#allocation5] sm:$0xff] %vm334_vm3, %v333_v0 }
 0x298   :  { %545 = shalt.err (!%p542_p9)
}
 0x299   :  { %345 = dma.vmem_to_hbm [thread:$0]  %s343_s25, 128, %s776_s7, [#allocation4]  }
 0x29a   :  { %556 = dma.done.wait [#allocation4], 128  }
 0x29b   :  { %557 = vsyncadd [#allocation4], 4294967168 }
 0x29c   :  { %349 = vsyncpa [#allocation3], 1 }
 0x29d   :  { %350 = vsyncpa [#allocation4], 1 }

</bundles_post_ra>
